<compile_context>
chip_gen: v7x
topology: tpu7x:2x2x1
jax: 0.10.0
libtpu: 0.0.40
codegen_flags: <defaults>
</compile_context>

<pallas_src>
import functools

import jax
import jax.numpy as jnp
import numpy as np
from jax import lax
from jax.experimental import pallas as pl
from jax.experimental.pallas import tpu as pltpu

EPS = 1e-5


@functools.lru_cache(maxsize=None)
def _probe_roll(_device_kind):
    """One-off tiny probe kernels (cached per device kind).

    Returns (roll_matches_jnp, bf16_roll_ok):
      * roll_matches_jnp: whether pltpu.roll follows jnp.roll's rotation direction.
      * bf16_roll_ok: whether lane rolls of bf16 data lower on this backend; if not,
        the main kernel rolls in f32 and casts per tap when writing the bf16 slab.
    The probes compile once at trace time and never run in steady state.
    """
    def probe(dtype):
        x = jnp.arange(8 * 256, dtype=jnp.float32).astype(dtype).reshape(8, 256)

        def kernel(x_ref, o_ref):
            o_ref[...] = pltpu.roll(x_ref[...], 1, 1)

        y = pl.pallas_call(
            kernel, out_shape=jax.ShapeDtypeStruct((8, 256), dtype))(x)
        return bool(jnp.array_equal(y, jnp.roll(x, 1, axis=1)))

    try:
        return probe(jnp.bfloat16), True
    except Exception:
        return probe(jnp.float32), False


def _pick_bt(N, C, HW, vmem_budget_bytes=24 * 1024 * 1024):
    """Largest divisor Bt of N that (a) keeps the per-step VMEM footprint under budget
    and (b) leaves >= 2 grid steps so v7x's two TensorCores both get work."""
    # Rough per-image bytes per grid step: double-buffered f32 input + output,
    # bf16 9-tap slab, plus ~3 f32-activation's worth of live-value headroom.
    per_img = HW * C * (2 * 4 + 2 * 4 + 9 * 2 + 3 * 4)
    max_bt = max(1, vmem_budget_bytes // per_img)
    best = 1
    for cand in range(1, N + 1):
        if N % cand != 0 or cand > max_bt:
            continue
        if (N // cand) >= 2 or N == 1:
            best = cand
    return best


def _make_kernel(H, W, C, Bt, roll_is_jnp, bf16_roll_ok):
    HW = H * W
    L = Bt * HW  # lane extent of one block: Bt images, flattened spatial

    def kernel(x_ref, s0_ref, b0_ref, w0_ref, s1_ref, b1_ref, w1_ref,
               wse1_ref, bse1_ref, wse2_ref, bse2_ref, o_ref, slab_ref):
        x = x_ref[...]                                     # (C, L) f32, lane-dense

        # ---- Border masks: computed ONCE, shared by both convs (hoisted). ----
        j = lax.broadcasted_iota(jnp.int32, (1, L), 1)
        jl = j % HW                                        # position inside its image
        h_pos = jl // W
        w_pos = jl % W
        top = h_pos >= 1          # valid lanes for tap rh = -1
        bot = h_pos <= H - 2      # valid lanes for tap rh = +1
        left = w_pos >= 1         # rw = -1
        right = w_pos <= W - 2    # rw = +1
        masks = {}
        for rh in (-1, 0, 1):
            for rw in (-1, 0, 1):
                m = None
                if rh == -1:
                    m = top
                elif rh == 1:
                    m = bot
                if rw == -1:
                    m = left if m is None else (m & left)
                elif rw == 1:
                    m = right if m is None else (m & right)
                masks[(rh, rw)] = m

        def bn_relu(t, scale_ref, shift_ref):
            # scale/shift are (C, 1) columns broadcast over the lane axis (VPU).
            return jnp.maximum(t * scale_ref[...] + shift_ref[...], 0.0)

        def conv3x3_same(t, w_ref):
            # Cast ONCE to bf16 (if bf16 lane-rolls lower), then roll/mask each tap and
            # store it straight into the VMEM scratch slab.  No 9-way concat -> each tap
            # is retired immediately, keeping the live vreg set small, and the MXU
            # streams the RHS from VMEM.
            src = t.astype(jnp.bfloat16) if bf16_roll_ok else t
            tap = 0
            for rh in (-1, 0, 1):
                for rw in (-1, 0, 1):
                    s = rh * W + rw
                    if s == 0:
                        piece = src
                    else:
                        shift = (-s if roll_is_jnp else s) % L
                        piece = pltpu.roll(src, shift, 1)
                    if not bf16_roll_ok:
                        piece = piece.astype(jnp.bfloat16)
                    m = masks[(rh, rw)]
                    if m is not None:
                        piece = jnp.where(m, piece, 0.0)
                    slab_ref[pl.ds(tap * C, C), :] = piece   # aligned sublane block
                    tap += 1
            # Single MXU matmul: (C, 9C) @ (9C, Bt*HW) -> (C, Bt*HW), f32 accumulation.
            return jnp.dot(w_ref[...], slab_ref[...],
                           preferred_element_type=jnp.float32)

        t = bn_relu(x, s0_ref, b0_ref)        # norm0 + ReLU   (lane-dense VPU)
        t = conv3x3_same(t, w0_ref)           # conv0          (one bf16 matmul)
        t = bn_relu(t, s1_ref, b1_ref)        # norm1 + ReLU
        y = conv3x3_same(t, w1_ref)           # conv1

        # ---- Squeeze-and-Excitation + residual, per image (static Bt-way unroll). ----
        for b in range(Bt):
            lo, hi = b * HW, (b + 1) * HW                     # multiples of HW (>=128)
            yb = y[:, lo:hi]                                  # (C, HW)
            s_col = jnp.mean(yb, axis=1, keepdims=True)       # (C, 1) global avg pool
            z_row = jnp.maximum(
                jnp.sum(wse1_ref[...] * s_col, axis=0, keepdims=True)
                + bse1_ref[...], 0.0)                         # (1, Cr)
            gate = jax.nn.sigmoid(
                jnp.sum(wse2_ref[...] * z_row, axis=1, keepdims=True)
                + bse2_ref[...])                              # (C, 1)
            # Residual re-reads the input block here instead of keeping an `identity`
            # value live across both convs (lower vreg pressure in the hot middle).
            o_ref[:, lo:hi] = (yb * gate + x_ref[:, lo:hi]).astype(o_ref.dtype)

    return kernel


def _full_spec(shape):
    nd = len(shape)
    return pl.BlockSpec(shape, lambda n, _nd=nd: (0,) * _nd)


def basic_block_forward(x_nchw, params):
    """x_nchw: (N, C, H, W) float32.  params: PyTorch-shaped parameter tuple."""
    (g0, be0, m0, v0, w0,
     g1, be1, m1, v1, w1,
     wse1, bse1, wse2, bse2) = params
    N, C, H, W = x_nchw.shape
    HW = H * W
    Cr = wse1.shape[0]
    assert HW % 128 == 0, "H*W must be a multiple of 128 for lane-dense layout"

    Bt = _pick_bt(N, C, HW)                      # images per grid step (divides N)
    G = N // Bt                                  # grid steps (>=2 when N>=2 -> megacore)
    L = Bt * HW

    # Channels-on-sublanes, (batch*spatial)-on-lanes layout.  The wrapper transpose is a
    # cheap bandwidth-bound XLA copy; it lets each conv be one matmul with a Bt*HW free
    # dim, amortizing grid-step overhead and MXU fill/drain at small per-image FLOPs.
    x = jnp.transpose(x_nchw.reshape(N, C, HW), (1, 0, 2)).reshape(C, N * HW)

    # Fold BatchNorm (eval mode) into per-channel scale + shift (column vectors).
    inv0 = g0 / jnp.sqrt(v0 + EPS)
    inv1 = g1 / jnp.sqrt(v1 + EPS)
    scale0 = inv0.reshape(C, 1)
    shift0 = (be0 - m0 * inv0).reshape(C, 1)
    scale1 = inv1.reshape(C, 1)
    shift1 = (be1 - m1 * inv1).reshape(C, 1)

    # PyTorch conv weights (O, I, kh, kw) -> (O, kh, kw, I) -> (O, 9*I) so the column
    # block t = kh*3 + kw matches the kernel's tap order.  bf16 for the MXU.
    w0cat = jnp.transpose(w0, (0, 2, 3, 1)).reshape(C, 9 * C).astype(jnp.bfloat16)
    w1cat = jnp.transpose(w1, (0, 2, 3, 1)).reshape(C, 9 * C).astype(jnp.bfloat16)

    # SE 1x1-conv weights oriented for in-kernel broadcast + reduce (no transposes).
    wse1t = wse1.reshape(Cr, C).T                # (C, Cr)
    bse1r = bse1.reshape(1, Cr)
    wse2m = wse2.reshape(C, Cr)                  # (C, Cr)
    bse2c = bse2.reshape(C, 1)

    roll_is_jnp, bf16_roll_ok = _probe_roll(jax.devices()[0].device_kind)
    kernel = _make_kernel(H, W, C, Bt, roll_is_jnp, bf16_roll_ok)

    cost = pl.CostEstimate(
        flops=int(N * (2 * 2 * HW * 9 * C * C + 4 * C * Cr + 3 * HW * C)),
        transcendentals=int(N * C),
        bytes_accessed=int(2 * x.size * 4 + 2 * C * 9 * C * 2 + (6 * C + 2 * Cr) * 4),
    )

    out = pl.pallas_call(
        kernel,
        out_shape=jax.ShapeDtypeStruct((C, N * HW), x.dtype),
        grid=(G,),
        in_specs=[
            pl.BlockSpec((C, L), lambda n: (0, n)),
            _full_spec((C, 1)), _full_spec((C, 1)), _full_spec((C, 9 * C)),
            _full_spec((C, 1)), _full_spec((C, 1)), _full_spec((C, 9 * C)),
            _full_spec((C, Cr)), _full_spec((1, Cr)),
            _full_spec((C, Cr)), _full_spec((C, 1)),
        ],
        out_specs=pl.BlockSpec((C, L), lambda n: (0, n)),
        scratch_shapes=[pltpu.VMEM((9 * C, L), jnp.bfloat16)],   # im2col slab
        compiler_params=pltpu.CompilerParams(
            dimension_semantics=("parallel",),      # batch blocks are independent
            vmem_limit_bytes=32 * 1024 * 1024),
        cost_estimate=cost,
    )(x, scale0, shift0, w0cat, scale1, shift1, w1cat,
      wse1t, bse1r, wse2m, bse2c)

    return jnp.transpose(out.reshape(C, N, HW), (1, 0, 2)).reshape(N, C, H, W)


def reference_forward(x, params):
    """Pure-JAX (XLA) reference of the same semantics, NCHW."""
    (g0, be0, m0, v0, w0,
     g1, be1, m1, v1, w1,
     wse1, bse1, wse2, bse2) = params
    C = x.shape[1]
    Cr = wse1.shape[0]

    def bn(t, g, b, m, v):
        inv = g / jnp.sqrt(v + EPS)
        return t * inv[None, :, None, None] + (b - m * inv)[None, :, None, None]

    def conv(t, w):
        return jax.lax.conv_general_dilated(
            t, w, window_strides=(1, 1), padding=((1, 1), (1, 1)),
            dimension_numbers=("NCHW", "OIHW", "NCHW"))

    t = jnp.maximum(bn(x, g0, be0, m0, v0), 0.0)
    t = conv(t, w0)
    t = jnp.maximum(bn(t, g1, be1, m1, v1), 0.0)
    y = conv(t, w1)

    s = y.mean(axis=(2, 3))                                    # (N, C)
    z = jnp.maximum(s @ wse1.reshape(Cr, C).T + bse1, 0.0)     # (N, Cr)
    gate = jax.nn.sigmoid(z @ wse2.reshape(C, Cr).T + bse2)    # (N, C)
    return y * gate[:, :, None, None] + x


if __name__ == "__main__":
    N, C, H, W = 2, 32, 16, 16
    ratio = 1.0 / 16
    Cr = max(1, int(C * ratio))

    key = jax.random.PRNGKey(0)
    ks = jax.random.split(key, 16)

    x = jax.random.normal(ks[0], (N, C, H, W), jnp.float32)

    wstd = 1.0 / (3.0 * (C ** 0.5))
    params = (
        1.0 + 0.1 * jax.random.normal(ks[1], (C,), jnp.float32),      # gamma0
        0.1 * jax.random.normal(ks[2], (C,), jnp.float32),            # beta0
        0.1 * jax.random.normal(ks[3], (C,), jnp.float32),            # running_mean0
        jax.random.uniform(ks[4], (C,), jnp.float32, 0.5, 1.5),       # running_var0
        wstd * jax.random.normal(ks[5], (C, C, 3, 3), jnp.float32),   # conv0 weight
        1.0 + 0.1 * jax.random.normal(ks[6], (C,), jnp.float32),      # gamma1
        0.1 * jax.random.normal(ks[7], (C,), jnp.float32),            # beta1
        0.1 * jax.random.normal(ks[8], (C,), jnp.float32),            # running_mean1
        jax.random.uniform(ks[9], (C,), jnp.float32, 0.5, 1.5),       # running_var1
        wstd * jax.random.normal(ks[10], (C, C, 3, 3), jnp.float32),  # conv1 weight
        (C ** -0.5) * jax.random.normal(ks[11], (Cr, C, 1, 1), jnp.float32),  # SE fc1 w
        0.1 * jax.random.normal(ks[12], (Cr,), jnp.float32),                   # SE fc1 b
        (Cr ** -0.5) * jax.random.normal(ks[13], (C, Cr, 1, 1), jnp.float32),  # SE fc2 w
        0.1 * jax.random.normal(ks[14], (C,), jnp.float32),                    # SE fc2 b
    )

    out = jax.block_until_ready(basic_block_forward(x, params))
    ref = jax.block_until_ready(reference_forward(x, params))

    assert out.shape == x.shape and out.dtype == x.dtype
    # Tolerance accounts for bf16 MXU inputs (accumulation is f32).
    np.testing.assert_allclose(np.asarray(out), np.asarray(ref),
                               atol=2e-2, rtol=2e-2)
    print("KERNEL_OK")
</pallas_src>

<mosaic_0001>
module attributes {stable_mosaic.version = 11 : i64} {
  func.func @kernel(%arg0: memref<8x256xbf16, #tpu.memory_space<vmem>>, %arg1: memref<8x256xbf16, #tpu.memory_space<vmem>>) attributes {dimension_semantics = [], scalar_prefetch = 0 : i64, scratch_operands = 0 : i64, tpu.core_type = #tpu.core_type<tc>} {
    %c0 = arith.constant 0 : index
    %c0_0 = arith.constant 0 : index
    %0 = vector.load %arg0[%c0, %c0_0] : memref<8x256xbf16, #tpu.memory_space<vmem>>, vector<8x256xbf16>
    %c1_i32 = arith.constant 1 : i32
    %1 = tpu.dynamic_rotate %0 by %c1_i32 dim 1 : vector<8x256xbf16>, i32 -> vector<8x256xbf16>
    %c0_1 = arith.constant 0 : index
    %c0_2 = arith.constant 0 : index
    %2 = vector.load %arg1[%c0_1, %c0_2] : memref<8x256xbf16, #tpu.memory_space<vmem>>, vector<8x256xbf16>
    tpu.vector_store %arg1[%c0_1, %c0_2], %1 {strides = array<i32>} : memref<8x256xbf16, #tpu.memory_space<vmem>>, vector<8x256xbf16>,
    return
  }
}

module attributes {stable_mosaic.version = 11 : i64} {
  func.func @kernel(%arg0: memref<8x256xf32, #tpu.memory_space<vmem>>, %arg1: memref<8x256xf32, #tpu.memory_space<vmem>>) attributes {dimension_semantics = [], scalar_prefetch = 0 : i64, scratch_operands = 0 : i64, tpu.core_type = #tpu.core_type<tc>} {
    %c0 = arith.constant 0 : index
    %c0_0 = arith.constant 0 : index
    %0 = vector.load %arg0[%c0, %c0_0] : memref<8x256xf32, #tpu.memory_space<vmem>>, vector<8x256xf32>
    %c1_i32 = arith.constant 1 : i32
    %1 = tpu.dynamic_rotate %0 by %c1_i32 dim 1 : vector<8x256xf32>, i32 -> vector<8x256xf32>
    %c0_1 = arith.constant 0 : index
    %c0_2 = arith.constant 0 : index
    %2 = vector.load %arg1[%c0_1, %c0_2] : memref<8x256xf32, #tpu.memory_space<vmem>>, vector<8x256xf32>
    tpu.vector_store %arg1[%c0_1, %c0_2], %1 {strides = array<i32>} : memref<8x256xf32, #tpu.memory_space<vmem>>, vector<8x256xf32>,
    return
  }
}

</mosaic_0001>

<bundles_post_ra>
// kernel: tpu_custom_call.1
= control target key start
LH: loop header
LB: loop body
LE: loop exit
PB: predicated region body
PF: predicated region fallthrough
CT: control target
= control target key end

     0   :  { %6 = vsyncpa [#allocation3], 0  ;;  %s137_s0 = inlined_call_operand.hbm [shape: f32[8,256], index: 0, kind: input, shape index: {}]   ;;  %s138_s1 = inlined_call_operand.hbm [shape: f32[8,256], index: 1, kind: output, shape index: {}]  }
   0x1   :  { %7 = vsyncpa [#allocation4], 0  ;;  %s100_s6 = smov [#allocation2]   ;;  %s52_s10 = scalar_lea.hbm %s137_s0, 256 }
   0x2   :  { %s14_s7 = sshll.u32 %s100_s6, 4  ;;  %p53_p0 = scmp.ne.s32.totalorder %s137_s0, %s52_s10  ;;  %s15_s7 = int_to_ptr.vmem [resolvable:$true] %s14_s7 }
   0x3   :  { %p56_p1 = scmp.lt.u32.totalorder %s52_s10, %s137_s0 }
   0x5   :  { %p58_p2 = pnand %p56_p1, %p53_p0 }
   0x7   :  { %61 = shalt.err (!%p58_p2)
}
   0x8   :  { %s62_s15 = scalar_lea.vmem %s15_s7, 256  ;;  %p67_p4 = scmp.lt.s32.totalorder %s15_s7, %s15_s7 }
   0x9   :  { %p63_p3 = scmp.ne.s32.totalorder %s15_s7, %s62_s15  ;;  %p68_p5 = scmp.lt.s32.totalorder %s62_s15, %s62_s15 }
   0xb   :  { %p69_p6 = por %p68_p5, %p67_p4 }
   0xd   :  { %p70_p7 = pnand %p69_p6, %p63_p3 }
   0xf   :  { %73 = shalt.err (!%p70_p7)
}
  0x10   :  { %17 = dma.hbm_to_vmem [thread:$0]  %s137_s0, 256, %s15_s7, [#allocation3]  }
  0x11   :  { %96 = dma.done.wait [#allocation3], 256  }
  0x12   :  { %97 = vsyncadd [#allocation3], 4294967040  ;;  %v21_v0 = vld [vmem:[#allocation2] sm:$0xff]  ;;  %s101_s18 = smov 1   ;;  %v22_v1 = vld [vmem:[#allocation2 + $0x8] sm:$0xff]  ;;  %v27_v2 = vlaneseq  ;;  %s102_s19 = smov [#allocation5]  }
  0x13   :  { %23 = vrot.lane.b32.xlu0 %v21_v0, %s101_s18  ;;  %s40_s20 = sshll.u32 %s102_s19, 4  ;;  %s41_s20 = int_to_ptr.vmem [resolvable:$true] %s40_s20 }
  0x14   :  { %v28_v3 = vand.u32 127, %v27_v2  ;;  %s74_s0 = scalar_lea.vmem %s41_s20, 256  ;;  %p79_p9 = scmp.lt.s32.totalorder %s41_s20, %s41_s20 }
  0x15   :  { %p75_p8 = scmp.ne.s32.totalorder %s41_s20, %s74_s0  ;;  %p80_p10 = scmp.lt.s32.totalorder %s74_s0, %s74_s0 }
  0x16   :  { %vm29_vm0 = vcmp.lt.s32.totalorder %v28_v3, 1 }
  0x17   :  { %25 = vrot.lane.b32.xlu0 %v22_v1, %s101_s18  ;;  %p81_p11 = por %p80_p10, %p79_p9 }
  0x19   :  { %p82_p12 = pnand %p81_p11, %p75_p8 }
  0x85   :  { %v24_v4 = vpop.permute.xlu0 %23 }
  0x89   :  { %v26_v5 = vpop.permute.xlu0 %25 }
  0x8a   :  { %v30_v6 = vsel %vm29_vm0, %v24_v4, %v26_v5  ;;  %v31_v7 = vsel %vm29_vm0, %v26_v5, %v24_v4 }
  0x8b   :  { %32 = vst [vmem:[#allocation5] sm:$0xff] %v31_v7  ;;  %33 = vst [vmem:[#allocation5 + $0x8] sm:$0xff] %v30_v6 }
  0x8c   :  { %85 = shalt.err (!%p82_p12)
}
  0x8d   :  { %s86_s23 = scalar_lea.hbm %s138_s1, 256 }
  0x8e   :  { %p87_p13 = scmp.ne.s32.totalorder %s138_s1, %s86_s23  ;;  %p90_p0 = scmp.lt.u32.totalorder %s86_s23, %s138_s1 }
  0x90   :  { %p92_p1 = pnand %p90_p0, %p87_p13 }
  0x92   :  { %95 = shalt.err (!%p92_p1)
}
  0x93   :  { %43 = dma.vmem_to_hbm [thread:$0]  %s41_s20, 256, %s138_s1, [#allocation4]  }
  0x94   :  { %98 = dma.done.wait [#allocation4], 256  }
  0x95   :  { %99 = vsyncadd [#allocation4], 4294967040 }
  0x96   :  { %47 = vsyncpa [#allocation3], 1 }
  0x97   :  { %48 = vsyncpa [#allocation4], 1 }

</bundles_post_ra>
